<compile_context>
chip_gen: v7x
topology: tpu7x:2x2x1
jax: 0.10.0
libtpu: 0.0.40
codegen_flags: <defaults>
</compile_context>

<pallas_src>
import functools

import numpy as np
import jax
import jax.numpy as jnp
from jax.experimental import pallas as pl
from jax.experimental.pallas import tpu as pltpu


def _round_up(x, m):
    return (x + m - 1) // m * m


def _physical_vmem_bytes():
    """Physical VMEM per core; conservative (v7x-sized) fallback on failure."""
    try:
        return int(pltpu.get_tpu_info().vmem_capacity_bytes)
    except Exception:
        return 64 << 20


def _choose_wc_tiling(wc, max_tn):
    """Return (WC_pad, tn): 128-aligned padded output width and a tile dividing it."""
    max_tn = max(128, max_tn)
    wc_min = _round_up(wc, 128)
    if wc_min <= max_tn:
        return wc_min, wc_min                       # single full-width block
    best = None
    for tn in (1024, 768, 512, 384, 256, 128):      # multiples of 128 (256-friendly)
        if tn > max_tn:
            continue
        wcp = _round_up(wc, tn)
        key = (wcp, -tn)                            # least zero-pad, then widest tile
        if best is None or key < best[0]:
            best = (key, wcp, tn)
    return best[1], best[2]


def _sgc_kernel(x_ref, w_ref, b_ref, o_ref):
    """One grid step: (tm, VC_pad) @ (VC_pad, tn) + bias -> (tm, tn), lane-dense."""
    acc = jnp.dot(x_ref[...], w_ref[...], preferred_element_type=jnp.float32)
    o_ref[...] = (acc + b_ref[...]).astype(o_ref.dtype)


@functools.partial(
    jax.jit,
    static_argnames=("s_kernel_size", "block_m", "max_block_n", "compute_dtype",
                     "out_dtype"))
def spatial_graph_conv(x, A, conv_weight, conv_bias, *, s_kernel_size,
                       block_m=1024, max_block_n=1024,
                       compute_dtype=jnp.bfloat16, out_dtype=None):
    """x: (N, C_in, T, V); A: (K, V, W); conv_weight: (K*C_out, C_in, 1, 1)."""
    N, C_in, T, V = x.shape
    K = s_kernel_size
    KC = conv_weight.shape[0]
    C_out = KC // K
    Wn = A.shape[2]
    M = N * T
    VC = V * C_in
    WC = Wn * C_out
    out_dtype = x.dtype if out_dtype is None else out_dtype
    cbytes = np.dtype(compute_dtype).itemsize
    obytes = np.dtype(out_dtype).itemsize

    # --- Fold conv weight + adjacency + bias into one GEMM operand (f32 fold). ---
    a32 = A.astype(jnp.float32)
    w2 = conv_weight.reshape(K, C_out, C_in).astype(jnp.float32)        # [k, c, ci]
    w_comb = jnp.einsum("kvw,kci->viwc", a32, w2,
                        precision=jax.lax.Precision.HIGHEST).reshape(VC, WC)
    b_comb = jnp.einsum("kvw,kc->wc", a32,
                        conv_bias.reshape(K, C_out).astype(jnp.float32),
                        precision=jax.lax.Precision.HIGHEST).reshape(1, WC)

    # --- Lane alignment: zero-pad contraction (VC) and output (WC) dims to 128. --
    VC_pad = _round_up(VC, 128)
    WC_pad, tn = _choose_wc_tiling(WC, max_block_n)
    if (VC_pad, WC_pad) != (VC, WC):
        w_comb = jnp.pad(w_comb, ((0, VC_pad - VC), (0, WC_pad - WC)))
    if WC_pad != WC:
        b_comb = jnp.pad(b_comb, ((0, 0), (0, WC_pad - WC)))
    w_comb = w_comb.astype(compute_dtype)     # bias stays f32 (added post-accum)

    # --- Activation relayout (N,C_in,T,V) -> (M, VC_pad).  Layout only;
    # allow_input_fusion below lets XLA absorb transpose + pad + cast into the
    # Pallas input copy rather than a standalone HBM relayout pass. ---
    x_p = jnp.transpose(x, (0, 2, 3, 1)).reshape(M, VC)
    if VC_pad != VC:
        x_p = jnp.pad(x_p, ((0, 0), (0, VC_pad - VC)))
    x_p = x_p.astype(compute_dtype)

    # --- Row tiling: multiple of 16 (bf16 sublane packing / v5e vst), no M pad;
    # the boundary block (if M % tm != 0) is masked on store. ---
    if M >= 16:
        tm = min(block_m, (M // 16) * 16)
    else:
        tm = _round_up(M, 8)
    # Keep a few grid steps in flight so input DMAs overlap compute.
    while tm > 256 and pl.cdiv(M, tm) < 4:
        tm = max(256, _round_up(tm // 2, 16))

    # --- VMEM budget from tile math (generation-aware: 64 MiB on v7x). ---
    phys_vmem = _physical_vmem_bytes()
    budget = min(int(phys_vmem * 0.7), 96 << 20)

    def tile_bytes(tm_):
        return (2 * tm_ * VC_pad * cbytes          # x slab (double-buffered)
                + 2 * VC_pad * tn * cbytes         # weight block (<=2 buffers)
                + 2 * 8 * tn * 4                   # bias row (sublane-padded)
                + 2 * tm_ * tn * obytes)           # output slab (double-buffered)

    while tm > 64 and tile_bytes(tm) > budget:
        tm = max(64, _round_up(tm // 2, 16))

    grid_m = pl.cdiv(M, tm)
    grid_n = WC_pad // tn
    vmem_limit = int(min(phys_vmem * 0.9,
                         max(tile_bytes(tm) * 1.5 + (4 << 20), 32 << 20)))

    # Grid-invariant (single WC block) weight is never re-DMA'd: single-buffer it
    # when the second buffer is big enough to matter for the VMEM budget.
    w_block_bytes = VC_pad * tn * cbytes
    if grid_n == 1 and w_block_bytes >= (1 << 20):
        w_spec = pl.BlockSpec((VC_pad, tn), lambda i, j: (0, j),
                              pipeline_mode=pl.Buffered(1))
    else:
        w_spec = pl.BlockSpec((VC_pad, tn), lambda i, j: (0, j))

    out_flat = pl.pallas_call(
        _sgc_kernel,
        out_shape=jax.ShapeDtypeStruct((M, WC_pad), out_dtype),
        grid_spec=pltpu.PrefetchScalarGridSpec(
            num_scalar_prefetch=0,
            grid=(grid_m, grid_n),
            in_specs=[
                pl.BlockSpec((tm, VC_pad), lambda i, j: (i, 0)),
                w_spec,
                pl.BlockSpec((1, tn), lambda i, j: (0, j)),
            ],
            out_specs=pl.BlockSpec((tm, tn), lambda i, j: (i, j)),
        ),
        compiler_params=pltpu.CompilerParams(
            dimension_semantics=("parallel", "parallel"),   # megacore-shardable
            vmem_limit_bytes=vmem_limit,
            allow_input_fusion=[True, False, False],
        ),
    )(x_p, w_comb, b_comb)

    # (M, WC_pad) -> drop pad cols -> (N, T, W, C_out) -> (N, C_out, T, W).
    if WC_pad != WC:
        out_flat = out_flat[:, :WC]
    return jnp.transpose(out_flat.reshape(N, T, Wn, C_out), (0, 3, 1, 2))


def _reference(x, A, conv_weight, conv_bias, *, s_kernel_size):
    """Pure-JAX f32 reference matching the PyTorch forward."""
    N, C_in, T, V = x.shape
    K = s_kernel_size
    KC = conv_weight.shape[0]
    C_out = KC // K
    w2 = conv_weight.reshape(KC, C_in)
    y = jnp.einsum("oc,nctv->notv", w2, x, precision=jax.lax.Precision.HIGHEST)
    y = y + conv_bias[None, :, None, None]
    y = y.reshape(N, K, C_out, T, V)
    return jnp.einsum("nkctv,kvw->nctw", y, A, precision=jax.lax.Precision.HIGHEST)


if __name__ == "__main__":
    key = jax.random.PRNGKey(0)

    def run_case(name, N, C_in, C_out, K, T, V, case_key):
        k1, k2, k3, k4 = jax.random.split(case_key, 4)
        x = jax.random.normal(k1, (N, C_in, T, V), dtype=jnp.float32)
        A = jax.random.normal(k2, (K, V, V), dtype=jnp.float32)
        conv_w = jax.random.normal(k3, (K * C_out, C_in, 1, 1), dtype=jnp.float32) * 0.1
        conv_b = jax.random.normal(k4, (K * C_out,), dtype=jnp.float32) * 0.1
        ref = _reference(x, A, conv_w, conv_b, s_kernel_size=K)

        # Default perf path: bf16 MXU operands, f32 accumulation (loose tol).
        out_bf16 = jax.block_until_ready(
            spatial_graph_conv(x, A, conv_w, conv_b, s_kernel_size=K))
        assert out_bf16.shape == (N, C_out, T, V), (name, out_bf16.shape)
        assert out_bf16.dtype == x.dtype, name
        assert jnp.allclose(out_bf16, ref, atol=5e-2, rtol=5e-2), name

        # f32 compute path: sanity-checks the fold / padding / indexing.
        out_f32 = jax.block_until_ready(
            spatial_graph_conv(x, A, conv_w, conv_b, s_kernel_size=K,
                               compute_dtype=jnp.float32))
        assert jnp.allclose(out_f32, ref, atol=5e-2, rtol=5e-2), name

    ka, kb = jax.random.split(key)
    # Small, already lane-aligned case (VC=64, WC=128).
    run_case("aligned", N=2, C_in=4, C_out=8, K=3, T=8, V=16, case_key=ka)
    # ST-GCN-style V=25 graph: exercises VC/WC zero-padding to 128 and the
    # masked boundary row-block (M=18 is not a multiple of tm=16).
    run_case("v25graph", N=2, C_in=3, C_out=16, K=3, T=9, V=25, case_key=kb)

    print("KERNEL_OK")
</pallas_src>

<mosaic_0001>
module attributes {stable_mosaic.version = 11 : i64} {
  func.func @_sgc_kernel(%arg0: i32, %arg1: i32, %arg2: memref<16x128xbf16, #tpu.memory_space<vmem>>, %arg3: memref<128x128xbf16, #tpu.memory_space<vmem>>, %arg4: memref<1x128xf32, #tpu.memory_space<vmem>>, %arg5: memref<16x128xf32, #tpu.memory_space<vmem>>) attributes {dimension_semantics = [#tpu.dimension_semantics<parallel>, #tpu.dimension_semantics<parallel>], iteration_bounds = array<i64: 1, 1>, scalar_prefetch = 0 : i64, scratch_operands = 0 : i64, tpu.core_type = #tpu.core_type<tc>, window_params = [{transform_indices = @transform_0, window_bounds = array<i64: 16, 128>}, {transform_indices = @transform_1, window_bounds = array<i64: 128, 128>}, {transform_indices = @transform_2, window_bounds = array<i64: 1, 128>}, {transform_indices = @transform_3, window_bounds = array<i64: 16, 128>}]} {
    %c0 = arith.constant 0 : index
    %c0_0 = arith.constant 0 : index
    %0 = vector.load %arg2[%c0, %c0_0] : memref<16x128xbf16, #tpu.memory_space<vmem>>, vector<16x128xbf16>
    %c0_1 = arith.constant 0 : index
    %c0_2 = arith.constant 0 : index
    %1 = vector.load %arg3[%c0_1, %c0_2] : memref<128x128xbf16, #tpu.memory_space<vmem>>, vector<128x128xbf16>
    %cst = arith.constant dense<0.000000e+00> : vector<16x128xf32>
    %2 = tpu.matmul %0, %1, %cst {dimension_numbers = #tpu.dot_dimension_numbers<[1], [0], [0], [1], [0, 0, 1, 1], [], []>} : vector<16x128xbf16>, vector<128x128xbf16>, vector<16x128xf32> -> vector<16x128xf32>
    %c0_3 = arith.constant 0 : index
    %c0_4 = arith.constant 0 : index
    %3 = vector.load %arg4[%c0_3, %c0_4] : memref<1x128xf32, #tpu.memory_space<vmem>>, vector<1x128xf32>
    %4 = vector.broadcast %3 : vector<1x128xf32> to vector<16x128xf32>
    %5 = arith.addf %2, %4 : vector<16x128xf32>
    %c0_5 = arith.constant 0 : index
    %c0_6 = arith.constant 0 : index
    %6 = vector.load %arg5[%c0_5, %c0_6] : memref<16x128xf32, #tpu.memory_space<vmem>>, vector<16x128xf32>
    tpu.vector_store %arg5[%c0_5, %c0_6], %5 {strides = array<i32>} : memref<16x128xf32, #tpu.memory_space<vmem>>, vector<16x128xf32>,
    return
  }
  func.func @transform_0(%arg0: i32, %arg1: i32) -> (i32, i32) {
    %c0_i32 = arith.constant 0 : i32
    %c0_i32_0 = arith.constant 0 : i32
    return %arg0, %c0_i32 : i32, i32
  }
  func.func @transform_1(%arg0: i32, %arg1: i32) -> (i32, i32) {
    %c0_i32 = arith.constant 0 : i32
    %c0_i32_0 = arith.constant 0 : i32
    return %c0_i32, %arg1 : i32, i32
  }
  func.func @transform_2(%arg0: i32, %arg1: i32) -> (i32, i32) {
    %c0_i32 = arith.constant 0 : i32
    %c0_i32_0 = arith.constant 0 : i32
    return %c0_i32, %arg1 : i32, i32
  }
  func.func @transform_3(%arg0: i32, %arg1: i32) -> (i32, i32) {
    %c0_i32 = arith.constant 0 : i32
    return %arg0, %arg1 : i32, i32
  }
}

</mosaic_0001>

<bundles_post_ra>
// kernel: spatial_graph_conv.2
= control target key start
LH: loop header
LB: loop body
LE: loop exit
PB: predicated region body
PF: predicated region fallthrough
CT: control target
= control target key end

     0   :  { %s306_s0 = inlined_call_operand.vmem [shape: bf16[128,128], index: 0, kind: input, shape index: {}]   ;;  %s307_s1 = inlined_call_operand.vmem [shape: f32[1,128], index: 1, kind: input, shape index: {}]   ;;  %s308_s2 = inlined_call_operand.vmem [shape: bf16[16,64], index: 2, kind: input, shape index: {}]   ;;  %s309_s3 = inlined_call_operand.<no memory space> [shape: bf16[], index: 3, kind: input, shape index: {}]   ;;  %s310_s4 = inlined_call_operand.vmem [shape: f32[16,128], index: 4, kind: output, shape index: {}]  }
   0x1   :  { %v9_v0 = vstv %s309_s3 }
   0x2   :  { %v10_v1 = vunpack.i.l.bf16 %v9_v0 }
   0x3   :  { %v231_v2 = vld [vmem:[%s306_s0] sm:$0xff]   ;;  %v32_v3 = vlaneseq  ;;  %v240_v4 = vmov 0.0   ;;  %v232_v5 = vld [vmem:[%s306_s0 + $0x8] sm:$0xff]   ;;  %vm241_vm0 = vmmov 0   ;;  %v233_v7 = vld [vmem:[%s306_s0 + $0x10] sm:$0xff]  }
   0x4   :  { %209 = vmatprep.subr.bf16.mxu0 %v240_v4  ;;  %225 = vmatprep.mubr.msk.bf16.mxu0 %vm241_vm0, %v240_v4  ;;  %v29_v8 = vld [vmem:[%s308_s2] sm:$0xff]   ;;  %v234_v11 = vld [vmem:[%s306_s0 + $0x18] sm:$0xff]   ;;  %v236_v17 = vld [vmem:[%s306_s0 + $0x28] sm:$0xff]  }
   0x5   :  { %210 = vmatpush3.bf16.msra.mxu0 %v231_v2  ;;  %v33_v6 = vand.u32 127, %v32_v3  ;;  %v30_v9 = vunpack.c.l.bf16 %v29_v8  ;;  %v51_v10 = vunpack.c.h.bf16 %v29_v8  ;;  %v235_v16 = vld [vmem:[%s306_s0 + $0x20] sm:$0xff]   ;;  %v237_v18 = vld [vmem:[%s306_s0 + $0x30] sm:$0xff]   ;;  %v238_v19 = vld [vmem:[%s306_s0 + $0x38] sm:$0xff]  }
   0x6   :  { %211 = vmatprep.subr.bf16.mxu0 %v240_v4  ;;  %v190_v21 = vld [vmem:[%s307_s1] ss:$0 sm:$0xff] }
   0x7   :  { %vm35_vm1 = vcmp.lt.s32.totalorder %v33_v6, 64 }
   0x8   :  { %v36_v12 = vsel %vm35_vm1, %v30_v9, %v10_v1  ;;  %v57_v13 = vsel %vm35_vm1, %v51_v10, %v10_v1 }
   0x9   :  { %212 = vmatpush3.bf16.msra.mxu0 %v232_v5  ;;  %v37_v14 = vpack.c.bf16 %v240_v4, %v36_v12  ;;  %v59_v15 = vpack.c.bf16 %v240_v4, %v57_v13 }
   0xa   :  { %213 = vmatprep.subr.bf16.mxu0 %v240_v4 }
   0xb   :  { %39 = vst [vmem:[#allocation7] sm:$0xf] %v37_v14  ;;  %61 = vst [vmem:[#allocation7 + $0x4] sm:$0xf] %v59_v15 }
   0xd   :  { %214 = vmatpush3.bf16.msra.mxu0 %v233_v7 }
   0xe   :  { %215 = vmatprep.subr.bf16.mxu0 %v240_v4 }
  0x11   :  { %216 = vmatpush3.bf16.msra.mxu0 %v234_v11 }
  0x12   :  { %217 = vmatprep.subr.bf16.mxu0 %v240_v4  ;;  %v239_v20 = vld [vmem:[#allocation7] sm:$0xff]  }
  0x15   :  { %218 = vmatpush3.bf16.msra.mxu0 %v235_v16 }
  0x16   :  { %219 = vmatprep.subr.bf16.mxu0 %v240_v4 }
  0x19   :  { %220 = vmatpush3.bf16.msra.mxu0 %v236_v17 }
  0x1a   :  { %221 = vmatprep.subr.bf16.mxu0 %v240_v4 }
  0x1d   :  { %222 = vmatpush3.bf16.msra.mxu0 %v237_v18 }
  0x1e   :  { %223 = vmatprep.subr.bf16.mxu0 %v240_v4 }
  0x21   :  { %224 = vmatpush3.bf16.msra.mxu0 %v238_v19 }
  0x24   :  { %226 = vmatmul.mubr.bf16.vlgmr.msra.gmra.mrb[0].mxu0 %v239_v20 }
  0xf7   :  { %v176_v22 = vpop.f32.mrb[0].mxu0 }
  0xf8   :  { %v177_v23 = vadd.f32 %v190_v21, %v176_v22  ;;  %v227_v24 = vpop.f32.mrb[1].mxu0 }
  0xf9   :  { %v179_v25 = vpop.f32.mrb[2].mxu0 }
  0xfa   :  { %183 = vst [vmem:[%s310_s4] sm:$0xff] %v177_v23  ;;  %v180_v26 = vadd.f32 %v190_v21, %v179_v25  ;;  %v228_v27 = vpop.f32.mrb[3].mxu0 }
  0xfc   :  { %184 = vst [vmem:[%s310_s4 + $0x8] sm:$0xff] %v180_v26 }

</bundles_post_ra>
